<compile_context>
chip_gen: v5e
topology: v5e:2x2
jax: 0.10.0
libtpu: 0.0.40
codegen_flags: <defaults>
</compile_context>

<pallas_src>
import numpy as np
import jax
import jax.numpy as jnp
from jax import lax
from jax.experimental import pallas as pl
from jax.experimental.pallas import tpu as pltpu

# ----------------------------- configuration --------------------------------
B        = 16            # batch; multiple of 16 keeps bf16 output stores full
                         # (production: raise B to 64-256 per call -- biggest
                         # lever, it amortizes each entity-table byte).
ENT_DIM  = 32            # args.ent_embed_dim (== rel embed dim in ConvE)
EMB1     = 4             # args.conv_embed_shape1
EMB2     = ENT_DIM // EMB1
FS       = 3             # args.conv_filter_size (< EMB1 and < EMB2)
CHANNELS = 4             # args.conv_channels
N_ENT    = 2048          # number of entities
TILE_N   = 1024          # entity tile: multiple of 128 (lane-dense output).
                         # 1024-4096 is the mem-bound sweet spot on all of
                         # v5e/v6e/v7x (per-step VMEM stays well under the
                         # scoped-VMEM default); on v7x keep the grid >= 2
                         # (ideally even) steps so both TensorCores get work.

CO1 = 2 * EMB1 - FS + 1                  # conv output height
CO2 = EMB2 - FS + 1                      # conv output width
CONV_HID = CHANNELS * CO1 * CO2          # fc input length
IN_FLAT  = 2 * ENT_DIM                   # flattened stacked (e1, rel) input

HIGH = lax.Precision.HIGHEST             # reference / one-time prep ONLY


# ------------------------------- the kernels ---------------------------------
def conve_dense_kernel(xin_ref, w1_ref, b1_ref, w2_ref, b2_ref, h_ref):
    """Grid-invariant head, executed exactly once (grid=(1,))."""
    # dense 1 = bn0 + conv(as im2col matmul) + bn1, then relu (inp_drop = id).
    feat = jnp.dot(xin_ref[...], w1_ref[...],
                   preferred_element_type=jnp.float32) + b1_ref[...]
    feat = jnp.maximum(feat, 0.0)
    # dense 2 = fc + bn2, then relu (hidden_drop = id).
    h = jnp.dot(feat, w2_ref[...],
                preferred_element_type=jnp.float32) + b2_ref[...]
    h = jnp.maximum(h, 0.0)
    h_ref[...] = h.astype(h_ref.dtype)            # bf16 operand for scoring


def conve_score_kernel(h_ref, ent_ref, bias_ref, out_ref):
    """Per entity tile: one bf16 matmul (f32 acc) + bias add + bf16 store."""
    scores = jnp.dot(h_ref[...], ent_ref[...],
                     preferred_element_type=jnp.float32)
    out_ref[...] = (scores + bias_ref[...].astype(jnp.float32)).astype(out_ref.dtype)


# ------------------------------ parameters ----------------------------------
def make_params(key):
    ks = jax.random.split(key, 8)

    def bn(k, n):
        kk = jax.random.split(k, 4)
        gamma = 1.0 + 0.1 * jax.random.normal(kk[0], (n,), jnp.float32)
        beta = 0.1 * jax.random.normal(kk[1], (n,), jnp.float32)
        mean = 0.1 * jax.random.normal(kk[2], (n,), jnp.float32)
        var = jnp.abs(1.0 + 0.1 * jax.random.normal(kk[3], (n,), jnp.float32))
        return gamma, beta, mean, var

    return {
        'conv_w': 0.3 * jax.random.normal(ks[0], (CHANNELS, 1, FS, FS), jnp.float32),
        'conv_b': 0.1 * jax.random.normal(ks[1], (CHANNELS,), jnp.float32),
        'fc_w':   0.1 * jax.random.normal(ks[2], (ENT_DIM, CONV_HID), jnp.float32),
        'fc_b':   0.1 * jax.random.normal(ks[3], (ENT_DIM,), jnp.float32),
        'ent_b':  0.1 * jax.random.normal(ks[4], (N_ENT,), jnp.float32),
        'bn0': bn(ks[5], 1),
        'bn1': bn(ks[6], CHANNELS),
        'bn2': bn(ks[7], ENT_DIM),
    }


def bn_scale_shift(bn_params, eps=1e-5):
    gamma, beta, mean, var = bn_params
    s = gamma / jnp.sqrt(var + eps)
    return s, beta - mean * s


def fold_params(p):
    """One-time parameter glue (outside the kernel and the per-call hot path)."""
    s0, t0 = bn_scale_shift(p['bn0'])
    s1, t1 = bn_scale_shift(p['bn1'])
    s2, t2 = bn_scale_shift(p['bn2'])

    # Exact im2col unroll of the conv: convolve the canonical basis so that
    # conv(x).reshape(B, -1) == x_flat @ Wc  (torch (c, oh, ow) column order).
    basis = jnp.eye(IN_FLAT, dtype=jnp.float32).reshape(IN_FLAT, 1, 2 * EMB1, EMB2)
    wc = lax.conv_general_dilated(basis, p['conv_w'], (1, 1), 'VALID',
                                  dimension_numbers=('NCHW', 'OIHW', 'NCHW'),
                                  precision=HIGH)
    wc = wc.reshape(IN_FLAT, CONV_HID)

    chan = jnp.repeat(jnp.arange(CHANNELS), CO1 * CO2)        # column -> channel
    # Fold bn0 (scalar affine on the stacked input) + conv bias + bn1.
    w1 = wc * (s0[0] * s1[chan])[None, :]
    b1 = (t0[0] * wc.sum(axis=0) + p['conv_b'][chan]) * s1[chan] + t1[chan]

    # Fold bn2 into fc.
    w2 = p['fc_w'].T * s2[None, :]
    b2 = p['fc_b'] * s2 + t2

    return {'w1': w1, 'b1': b1[None, :], 'w2': w2, 'b2': b2[None, :]}


def prep_entity_table(ent_emb, ent_bias):
    """One-time prep: transpose + bf16-cast + pad entity table/bias to TILE_N."""
    n_ent = ent_emb.shape[0]
    n_pad = ((n_ent + TILE_N - 1) // TILE_N) * TILE_N
    ent_t = jnp.asarray(ent_emb.T, jnp.bfloat16)              # (ENT_DIM, n_ent)
    bias = jnp.asarray(ent_bias, jnp.bfloat16)[None, :]       # (1, n_ent)
    if n_pad != n_ent:
        ent_t = jnp.pad(ent_t, ((0, 0), (0, n_pad - n_ent)))
        bias = jnp.pad(bias, ((0, 0), (0, n_pad - n_ent)))
    return ent_t, bias, n_ent


# ------------------------------ the wrapper ----------------------------------
def conve_pallas(e1, rel, ent_t_pad, ent_bias_pad, n_ent, f):
    b = e1.shape[0]
    n_pad = ent_t_pad.shape[1]
    assert n_pad % TILE_N == 0                                # guaranteed by prep
    n_tiles = n_pad // TILE_N

    # stacked (e1, rel) image flattened == simple concat along the lane axis.
    xin = jnp.concatenate([e1, rel], axis=1)                  # (B, IN_FLAT), tiny

    # (1) grid-invariant head: run ONCE, not per entity tile.
    h_bf16 = pl.pallas_call(
        conve_dense_kernel,
        out_shape=jax.ShapeDtypeStruct((b, ENT_DIM), jnp.bfloat16),
        grid_spec=pltpu.PrefetchScalarGridSpec(
            num_scalar_prefetch=0,
            grid=(1,),
            in_specs=[
                pl.BlockSpec((b, IN_FLAT), lambda i: (0, 0)),
                pl.BlockSpec((IN_FLAT, CONV_HID), lambda i: (0, 0)),
                pl.BlockSpec((1, CONV_HID), lambda i: (0, 0)),
                pl.BlockSpec((CONV_HID, ENT_DIM), lambda i: (0, 0)),
                pl.BlockSpec((1, ENT_DIM), lambda i: (0, 0)),
            ],
            out_specs=pl.BlockSpec((b, ENT_DIM), lambda i: (0, 0)),
        ),
    )(xin, f['w1'], f['b1'], f['w2'], f['b2'])

    # (2) HBM-bound scoring sweep over lane-dense entity tiles.
    cost = pl.CostEstimate(
        flops=2 * b * ENT_DIM * n_pad,
        transcendentals=0,
        bytes_accessed=(ENT_DIM * n_pad * 2        # bf16 entity table
                        + n_pad * 2                # bf16 entity bias
                        + b * ENT_DIM * 2          # bf16 h (resident)
                        + b * n_pad * 2),          # bf16 scores out
    )
    scores = pl.pallas_call(
        conve_score_kernel,
        out_shape=jax.ShapeDtypeStruct((b, n_pad), jnp.bfloat16),
        grid_spec=pltpu.PrefetchScalarGridSpec(
            num_scalar_prefetch=0,
            grid=(n_tiles,),
            in_specs=[
                pl.BlockSpec((b, ENT_DIM), lambda i: (0, 0)),      # h (resident)
                pl.BlockSpec((ENT_DIM, TILE_N), lambda i: (0, i)), # entity tile
                pl.BlockSpec((1, TILE_N), lambda i: (0, i)),       # entity bias
            ],
            out_specs=pl.BlockSpec((b, TILE_N), lambda i: (0, i)), # lane-dense out
        ),
        compiler_params=pltpu.CompilerParams(
            dimension_semantics=("parallel",)),
        cost_estimate=cost,
    )(h_bf16, ent_t_pad, ent_bias_pad)

    return scores[:, :n_ent]                                   # drop tile padding


# --------------------------- pure-JAX reference ------------------------------
def conve_reference(e1, rel, ent, p):
    s0, t0 = bn_scale_shift(p['bn0'])
    s1, t1 = bn_scale_shift(p['bn1'])
    s2, t2 = bn_scale_shift(p['bn2'])
    b = e1.shape[0]

    x = jnp.concatenate([e1.reshape(b, 1, EMB1, EMB2),
                         rel.reshape(b, 1, EMB1, EMB2)], axis=2)     # stack on H
    x = x * s0[0] + t0[0]                                            # bn0 (eval)
    x = lax.conv_general_dilated(x, p['conv_w'], (1, 1), 'VALID',
                                 dimension_numbers=('NCHW', 'OIHW', 'NCHW'),
                                 precision=HIGH)
    x = x + p['conv_b'][None, :, None, None]
    x = x * s1[None, :, None, None] + t1[None, :, None, None]        # bn1
    x = jnp.maximum(x, 0.0)
    x = x.reshape(b, -1)
    x = jnp.dot(x, p['fc_w'].T, precision=HIGH) + p['fc_b']          # fc
    x = jnp.maximum(x * s2 + t2, 0.0)                                # bn2 + relu
    return jnp.dot(x, ent.T, precision=HIGH) + p['ent_b'][None, :]


# ---------------------------------- main -------------------------------------
if __name__ == "__main__":
    key = jax.random.PRNGKey(0)
    k1, k2, k3, k4 = jax.random.split(key, 4)
    e1 = jax.random.normal(k1, (B, ENT_DIM), jnp.float32)
    rel = jax.random.normal(k2, (B, ENT_DIM), jnp.float32)
    ent = jax.random.normal(k3, (N_ENT, ENT_DIM), jnp.float32)
    params = make_params(k4)

    # One-time prep (not per-call): fold BN/conv into dense weights; store the
    # entity table pre-transposed, bf16, padded to a TILE_N multiple.
    folded = fold_params(params)
    ent_t_pad, ent_bias_pad, n_ent = prep_entity_table(ent, params['ent_b'])

    out = jax.block_until_ready(
        conve_pallas(e1, rel, ent_t_pad, ent_bias_pad, n_ent, folded))
    ref = jax.block_until_ready(conve_reference(e1, rel, ent, params))

    assert out.shape == (B, N_ENT) and out.dtype == jnp.bfloat16
    # bf16 scoring operands + bf16 output vs. an f32 HIGHEST-precision reference.
    np.testing.assert_allclose(np.asarray(out, dtype=np.float32), np.asarray(ref),
                               rtol=3e-2, atol=2e-1)
    print("KERNEL_OK")
</pallas_src>

<mosaic_0001>
module attributes {stable_mosaic.version = 11 : i64} {
  func.func @conve_dense_kernel(%arg0: i32, %arg1: memref<16x64xf32, #tpu.memory_space<vmem>>, %arg2: memref<64x144xf32, #tpu.memory_space<vmem>>, %arg3: memref<1x144xf32, #tpu.memory_space<vmem>>, %arg4: memref<144x32xf32, #tpu.memory_space<vmem>>, %arg5: memref<1x32xf32, #tpu.memory_space<vmem>>, %arg6: memref<16x32xbf16, #tpu.memory_space<vmem>>) attributes {dimension_semantics = [#tpu.dimension_semantics<arbitrary>], iteration_bounds = array<i64: 1>, scalar_prefetch = 0 : i64, scratch_operands = 0 : i64, tpu.core_type = #tpu.core_type<tc>, window_params = [{pipeline_mode = #tpu.pipeline_mode<synchronous>, transform_indices = @transform_0, window_bounds = array<i64: 16, 64>}, {pipeline_mode = #tpu.pipeline_mode<synchronous>, transform_indices = @transform_1, window_bounds = array<i64: 64, 144>}, {pipeline_mode = #tpu.pipeline_mode<synchronous>, transform_indices = @transform_2, window_bounds = array<i64: 1, 144>}, {pipeline_mode = #tpu.pipeline_mode<synchronous>, transform_indices = @transform_3, window_bounds = array<i64: 144, 32>}, {pipeline_mode = #tpu.pipeline_mode<synchronous>, transform_indices = @transform_4, window_bounds = array<i64: 1, 32>}, {pipeline_mode = #tpu.pipeline_mode<synchronous>, transform_indices = @transform_5, window_bounds = array<i64: 16, 32>}]} {
    %c0 = arith.constant 0 : index
    %c0_0 = arith.constant 0 : index
    %0 = vector.load %arg1[%c0, %c0_0] : memref<16x64xf32, #tpu.memory_space<vmem>>, vector<16x64xf32>
    %c0_1 = arith.constant 0 : index
    %c0_2 = arith.constant 0 : index
    %1 = vector.load %arg2[%c0_1, %c0_2] : memref<64x144xf32, #tpu.memory_space<vmem>>, vector<64x144xf32>
    %cst = arith.constant dense<0.000000e+00> : vector<16x144xf32>
    %2 = tpu.matmul %0, %1, %cst {dimension_numbers = #tpu.dot_dimension_numbers<[1], [0], [0], [1], [0, 0, 1, 1], [], []>} : vector<16x64xf32>, vector<64x144xf32>, vector<16x144xf32> -> vector<16x144xf32>
    %c0_3 = arith.constant 0 : index
    %c0_4 = arith.constant 0 : index
    %3 = vector.load %arg3[%c0_3, %c0_4] : memref<1x144xf32, #tpu.memory_space<vmem>>, vector<1x144xf32>
    %4 = vector.broadcast %3 : vector<1x144xf32> to vector<16x144xf32>
    %5 = arith.addf %2, %4 : vector<16x144xf32>
    %cst_5 = arith.constant 0.000000e+00 : f32
    %6 = vector.broadcast %cst_5 : f32 to vector<16x144xf32>
    %7 = arith.maximumf %5, %6 : vector<16x144xf32>
    %c0_6 = arith.constant 0 : index
    %c0_7 = arith.constant 0 : index
    %8 = vector.load %arg4[%c0_6, %c0_7] : memref<144x32xf32, #tpu.memory_space<vmem>>, vector<144x32xf32>
    %cst_8 = arith.constant dense<0.000000e+00> : vector<16x32xf32>
    %9 = tpu.matmul %7, %8, %cst_8 {dimension_numbers = #tpu.dot_dimension_numbers<[1], [0], [0], [1], [0, 0, 1, 1], [], []>} : vector<16x144xf32>, vector<144x32xf32>, vector<16x32xf32> -> vector<16x32xf32>
    %c0_9 = arith.constant 0 : index
    %c0_10 = arith.constant 0 : index
    %10 = vector.load %arg5[%c0_9, %c0_10] : memref<1x32xf32, #tpu.memory_space<vmem>>, vector<1x32xf32>
    %11 = vector.broadcast %10 : vector<1x32xf32> to vector<16x32xf32>
    %12 = arith.addf %9, %11 : vector<16x32xf32>
    %cst_11 = arith.constant 0.000000e+00 : f32
    %13 = vector.broadcast %cst_11 : f32 to vector<16x32xf32>
    %14 = arith.maximumf %12, %13 : vector<16x32xf32>
    %15 = arith.truncf %14 : vector<16x32xf32> to vector<16x32xbf16>
    %c0_12 = arith.constant 0 : index
    %c0_13 = arith.constant 0 : index
    %16 = vector.load %arg6[%c0_12, %c0_13] : memref<16x32xbf16, #tpu.memory_space<vmem>>, vector<16x32xbf16>
    tpu.vector_store %arg6[%c0_12, %c0_13], %15 {strides = array<i32>} : memref<16x32xbf16, #tpu.memory_space<vmem>>, vector<16x32xbf16>,
    return
  }
  func.func @transform_0(%arg0: i32) -> (i32, i32) {
    %c0_i32 = arith.constant 0 : i32
    %c0_i32_0 = arith.constant 0 : i32
    %c0_i32_1 = arith.constant 0 : i32
    return %c0_i32, %c0_i32_0 : i32, i32
  }
  func.func @transform_1(%arg0: i32) -> (i32, i32) {
    %c0_i32 = arith.constant 0 : i32
    %c0_i32_0 = arith.constant 0 : i32
    %c0_i32_1 = arith.constant 0 : i32
    return %c0_i32, %c0_i32_0 : i32, i32
  }
  func.func @transform_2(%arg0: i32) -> (i32, i32) {
    %c0_i32 = arith.constant 0 : i32
    %c0_i32_0 = arith.constant 0 : i32
    %c0_i32_1 = arith.constant 0 : i32
    return %c0_i32, %c0_i32_0 : i32, i32
  }
  func.func @transform_3(%arg0: i32) -> (i32, i32) {
    %c0_i32 = arith.constant 0 : i32
    %c0_i32_0 = arith.constant 0 : i32
    %c0_i32_1 = arith.constant 0 : i32
    return %c0_i32, %c0_i32_0 : i32, i32
  }
  func.func @transform_4(%arg0: i32) -> (i32, i32) {
    %c0_i32 = arith.constant 0 : i32
    %c0_i32_0 = arith.constant 0 : i32
    %c0_i32_1 = arith.constant 0 : i32
    return %c0_i32, %c0_i32_0 : i32, i32
  }
  func.func @transform_5(%arg0: i32) -> (i32, i32) {
    %c0_i32 = arith.constant 0 : i32
    %c0_i32_0 = arith.constant 0 : i32
    %c0_i32_1 = arith.constant 0 : i32
    return %c0_i32, %c0_i32_0 : i32, i32
  }
}

</mosaic_0001>

<bundles_post_ra>
// kernel: tpu_custom_call.1
= control target key start
LH: loop header
LB: loop body
LE: loop exit
PB: predicated region body
PF: predicated region fallthrough
CT: control target
= control target key end

     0   :  { %s392_s0 = inlined_call_operand.vmem [shape: f32[16,64], index: 0, kind: input, shape index: {}]   ;;  %s393_s1 = inlined_call_operand.vmem [shape: f32[64,144], index: 1, kind: input, shape index: {}]   ;;  %s394_s2 = inlined_call_operand.vmem [shape: f32[1,144], index: 2, kind: input, shape index: {}]   ;;  %s395_s3 = inlined_call_operand.vmem [shape: f32[144,32], index: 3, kind: input, shape index: {}]   ;;  %s396_s4 = inlined_call_operand.vmem [shape: f32[1,32], index: 4, kind: input, shape index: {}]   ;;  %s397_s5 = inlined_call_operand.hbm [shape: bf16[16,32], index: 5, kind: output, shape index: {}]  }
   0x1   :  { %v37_v0 = vld [vmem:[%s393_s1 + $0x70] sm:$0xff]  ;;  %v35_v1 = vld [vmem:[%s393_s1 + $0x60] sm:$0xff]  ;;  %v38_v2 = vld [vmem:[%s393_s1 + $0x78] sm:$0xff] }
   0x2   :  { %60 = vmatpush.msra.mxu0 %v37_v0  ;;  %83 = vmatpush.msra.mxu1 %v38_v2  ;;  %v36_v3 = vld [vmem:[%s393_s1 + $0x68] sm:$0xff]  ;;  %v33_v4 = vld [vmem:[%s393_s1 + $0x50] sm:$0xff]  ;;  %v34_v5 = vld [vmem:[%s393_s1 + $0x58] sm:$0xff] }
   0x3   :  { %v31_v6 = vld [vmem:[%s393_s1 + $0x40] sm:$0xff]  ;;  %v32_v7 = vld [vmem:[%s393_s1 + $0x48] sm:$0xff]  ;;  %v29_v8 = vld [vmem:[%s393_s1 + $0x30] sm:$0xff] }
   0x4   :  { %61 = vmatpush.msra.mxu0 %v35_v1  ;;  %84 = vmatpush.msra.mxu1 %v36_v3  ;;  %v30_v9 = vld [vmem:[%s393_s1 + $0x38] sm:$0xff]  ;;  %v116_v11 = vld [vmem:[%s395_s3 + $0x70] sm:$0xff]  ;;  %v27_v12 = vld [vmem:[%s393_s1 + $0x20] sm:$0xff] }
   0x5   :  { %v117_v10 = vld [vmem:[%s395_s3 + $0x78] sm:$0xff]  ;;  %v28_v13 = vld [vmem:[%s393_s1 + $0x28] sm:$0xff]  ;;  %v25_v15 = vld [vmem:[%s393_s1 + $0x10] sm:$0xff] }
   0x6   :  { %62 = vmatpush.msra.mxu0 %v33_v4  ;;  %85 = vmatpush.msra.mxu1 %v34_v5  ;;  %v115_v14 = vld [vmem:[%s395_s3 + $0x68] sm:$0xff]  ;;  %v26_v16 = vld [vmem:[%s393_s1 + $0x18] sm:$0xff]  ;;  %v114_v17 = vld [vmem:[%s395_s3 + $0x60] sm:$0xff] }
   0x7   :  { %131 = vmatpush.msra.mxu2 %v117_v10 }
   0x8   :  { %63 = vmatpush.msra.mxu0 %v31_v6  ;;  %86 = vmatpush.msra.mxu1 %v32_v7 }
   0x9   :  { %132 = vmatpush.msra.mxu2 %v116_v11 }
   0xa   :  { %64 = vmatpush.msra.mxu0 %v29_v8  ;;  %87 = vmatpush.msra.mxu1 %v30_v9 }
   0xc   :  { %65 = vmatpush.msra.mxu0 %v27_v12  ;;  %88 = vmatpush.msra.mxu1 %v28_v13 }
   0xd   :  { %10 = vsyncpa [#allocation3], 0  ;;  %v23_v18 = vld [vmem:[%s393_s1] sm:$0xff]  ;;  %v24_v19 = vld [vmem:[%s393_s1 + $0x8] sm:$0xff]  ;;  %133 = vmatpush.msra.mxu2 %v115_v14  ;;  %vm45_vm0 = vcmask 523264   ;;  %vm124_vm1 = vcmask 130048  }
   0xe   :  { %66 = vmatpush.msra.mxu0 %v25_v15  ;;  %89 = vmatpush.msra.mxu1 %v26_v16  ;;  %v21_v20 = vld [vmem:[%s392_s0] sm:$0xff]  ;;  %v113_v21 = vld [vmem:[%s395_s3 + $0x58] sm:$0xff]  ;;  %v112_v22 = vld [vmem:[%s395_s3 + $0x50] sm:$0xff]  ;;  %vm181_vm2 = vcmask 257024   ;;  %s238_s14 = smov [#allocation2]   ;;  %s190_s18 = sshll.u32 %s397_s5, 4  ;;  %s191_s18 = int_to_ptr.hbm [resolvable:$true] %s190_s18 }
   0xf   :  { %134 = vmatpush.msra.mxu2 %v114_v17  ;;  %v111_v23 = vld [vmem:[%s395_s3 + $0x48] sm:$0xff]  ;;  %v110_v24 = vld [vmem:[%s395_s3 + $0x40] sm:$0xff]  ;;  %v109_v26 = vld [vmem:[%s395_s3 + $0x38] sm:$0xff]  ;;  %s188_s15 = sshll.u32 %s238_s14, 4  ;;  %s240_s19 = smov 4   ;;  %s189_s15 = int_to_ptr.vmem [resolvable:$true] %s188_s15 }
  0x10   :  { %67 = vmatpush.msra.mxu0 %v23_v18  ;;  %90 = vmatpush.msra.mxu1 %v24_v19  ;;  %v22_v25 = vld [vmem:[%s392_s0 + $0x8] sm:$0xff]  ;;  %v108_v27 = vld [vmem:[%s395_s3 + $0x30] sm:$0xff]  ;;  %v106_v29 = vld [vmem:[%s395_s3 + $0x20] sm:$0xff] }
  0x11   :  { %202 = vmatmul.msk.f32.vlgmr.msra.gmra.mxu0 %vm45_vm0, %v21_v20  ;;  %204 = vmatmul.msk.f32.vlgmr.msra.gmra.mxu1 %vm45_vm0, %v21_v20  ;;  %v107_v28 = vld [vmem:[%s395_s3 + $0x28] sm:$0xff]  ;;  %v105_v30 = vld [vmem:[%s395_s3 + $0x18] sm:$0xff]  ;;  %v104_v31 = vld [vmem:[%s395_s3 + $0x10] sm:$0xff] }
  0x12   :  { %135 = vmatpush.msra.mxu2 %v113_v21  ;;  %v103_v32 = vld [vmem:[%s395_s3 + $0x8] sm:$0xff]  ;;  %v102_v33 = vld [vmem:[%s395_s3] sm:$0xff] }
  0x13   :  { %v119_v34 = vld [vmem:[%s395_s3 + $0x88] sm:$0xff]  ;;  %v118_v35 = vld [vmem:[%s395_s3 + $0x80] sm:$0xff] }
  0x14   :  { %136 = vmatpush.msra.mxu2 %v112_v22  ;;  %168 = vmatpush.msra.mxu3 %v119_v34  ;;  %v39_v36 = vld [vmem:[%s394_s2] sm:$0x3] }
  0x15   :  { %v41_v37 = vperm.slane %v39_v36, 0  ;;  %v42_v38 = vperm.slane %v39_v36, 1  ;;  %v211_v51 = vld [vmem:[%s396_s4] ss:$0 sm:$0xff]  ;;  %s239_s4 = smov 64  }
  0x16   :  { %137 = vmatpush.msra.mxu2 %v111_v23  ;;  %169 = vmatpush.msra.mxu3 %v118_v35 }
  0x18   :  { %138 = vmatpush.msra.mxu2 %v110_v24 }
  0x19   :  { %203 = vmatmul.msk.f32.gmra.mxu0 %vm45_vm0, %v22_v25  ;;  %205 = vmatmul.msk.f32.gmra.mxu1 %vm45_vm0, %v22_v25 }
  0x1a   :  { %139 = vmatpush.msra.mxu2 %v109_v26 }
  0x1c   :  { %140 = vmatpush.msra.mxu2 %v108_v27 }
  0x1e   :  { %141 = vmatpush.msra.mxu2 %v107_v28 }
  0x20   :  { %142 = vmatpush.msra.mxu2 %v106_v29 }
  0x22   :  { %143 = vmatpush.msra.mxu2 %v105_v30 }
  0x24   :  { %144 = vmatpush.msra.mxu2 %v104_v31 }
  0x26   :  { %145 = vmatpush.msra.mxu2 %v103_v32 }
  0x28   :  { %146 = vmatpush.msra.mxu2 %v102_v33 }
  0x8e   :  { %v69_v39 = vpop.f32.mrf.mxu0  ;;  %v92_v40 = vpop.f32.mrf.mxu1 }
  0x8f   :  { %v70_v41 = vadd.f32 %v69_v39, %v41_v37  ;;  %v93_v42 = vadd.f32 %v92_v40, %v42_v38 }
  0x91   :  { %v98_v43 = vmax.f32 %v70_v41, 0.0  ;;  %v99_v44 = vmax.f32 %v93_v42, 0.0 }
  0x93   :  { %147 = vmatmul.f32.vlgmr.msra.gmra.mxu2 %v98_v43  ;;  %206 = vmatmul.msk.f32.vlgmr.msra.gmra.mxu3 %vm124_vm1, %v99_v44 }
  0x96   :  { %v72_v45 = vpop.f32.mrf.mxu0  ;;  %v95_v46 = vpop.f32.mrf.mxu1 }
  0x97   :  { %v73_v47 = vadd.f32 %v72_v45, %v41_v37  ;;  %v96_v48 = vadd.f32 %v95_v46, %v42_v38 }
  0x99   :  { %v100_v49 = vmax.f32 %v73_v47, 0.0  ;;  %v101_v50 = vmax.f32 %v96_v48, 0.0 }
  0x9b   :  { %150 = vmatmul.f32.gmra.mxu2 %v100_v49  ;;  %207 = vmatmul.msk.f32.gmra.mxu3 %vm124_vm1, %v101_v50 }
 0x116   :  { %v148_v52 = vpop.f32.mrf.mxu2  ;;  %v171_v53 = vpop.f32.mrf.mxu3 }
 0x117   :  { %v149_v54 = vadd.f32 %v211_v51, %v148_v52 }
 0x119   :  { %v172_v55 = vadd.f32 %v171_v53, %v149_v54 }
 0x11b   :  { %v177_v56 = vmax.f32 %v172_v55, 0.0 }
 0x11d   :  { %v179_v57 = vpack.c.bf16 %v177_v56, %v177_v56 }
 0x11e   :  { %v151_v58 = vpop.f32.mrf.mxu2  ;;  %v174_v59 = vpop.f32.mrf.mxu3 }
 0x11f   :  { %182 = vst.msk [vmem:[#allocation2] sm:$0xf] %vm181_vm2, %v179_v57  ;;  %v152_v60 = vadd.f32 %v211_v51, %v151_v58 }
 0x121   :  { %v175_v61 = vadd.f32 %v174_v59, %v152_v60 }
 0x123   :  { %v178_v62 = vmax.f32 %v175_v61, 0.0 }
 0x125   :  { %v180_v63 = vpack.c.bf16 %v178_v62, %v178_v62 }
 0x127   :  { %183 = vst.msk [vmem:[#allocation2 + $0x4] sm:$0xf] %vm181_vm2, %v180_v63 }
 0x128   :  { %196 = dma.vmem_to_hbm [thread:$0]  %s189_s15, 128, %s191_s18, [#allocation3], %s239_s4, %s239_s4, %s240_s19  }
 0x129   :  { %236 = dma.done.wait [#allocation3], 128  }
 0x12a   :  { %237 = vsyncadd [#allocation3], 4294967168 }
 0x12b   :  { %201 = vsyncpa [#allocation3], 1 }

</bundles_post_ra>
